<compile_context>
chip_gen: v7x
topology: tpu7x:2x2x1
jax: 0.10.0
libtpu: 0.0.40
codegen_flags: <defaults>
</compile_context>

<pallas_src>
import jax
import jax.numpy as jnp
from jax.experimental import pallas as pl
from jax.experimental.pallas import tpu as pltpu


def _round_up(v, m):
    return ((v + m - 1) // m) * m


def _vmem_capacity_bytes():
    """Best-effort physical VMEM query; conservative (v7x-sized) fallback."""
    try:
        info = pltpu.get_tpu_info()
        v = getattr(info, "vmem_capacity_bytes", None)
        if v:
            return int(v)
    except Exception:
        pass
    return 64 << 20


def _choose_tn(N, L, E, K, T, O, OT_pad, *, small_vmem):
    """Sequences-per-block from a per-generation VMEM budget."""
    x_bytes, f32_bytes = 2, 4
    per_seq = (
        2 * L * E * x_bytes            # double-buffered bf16 input block
        + 2 * OT_pad * f32_bytes       # double-buffered f32 output block
        + L * K * O * f32_bytes        # f32 matmul result (TN*L, K*O)
        + (T * O + 2 * OT_pad) * f32_bytes  # accumulator + padded epilogue temps
    )
    # v5e/v6e: 128 MiB VMEM -> big blocks (review: ~24 MiB budget, cap 512-1024).
    # v7x-class (<=64 MiB): keep the conservative budget and smaller cap.
    budget = (12 << 20) if small_vmem else (24 << 20)
    cap = 256 if small_vmem else 1024
    tn = budget // max(per_seq, 1)
    tn = max(8, min(cap, (tn // 8) * 8))          # multiple of 8 sublanes
    n8 = _round_up(N, 8)
    tn = min(tn, n8)
    # Only v7x-class chips have 2 TensorCores: prefer >= 2 parallel grid blocks
    # there; on v5e/v6e (1 TC) splitting just adds per-step overhead.
    if small_vmem and tn >= n8 and n8 >= 16:
        tn = _round_up(n8 // 2, 8)
    return tn


def make_conv1d_tanh(N_pad, TN, L, E, K, O, OT_pad, vmem_limit,
                     out_dtype=jnp.float32):
    T = L - K + 1
    KO = K * O
    OT = T * O

    def kernel(x_ref, w_ref, b_ref, o_ref):
        # x_ref: (TN, L, E) bf16, w_ref: (E, K*O) bf16,
        # b_ref: (1, OT_pad) f32,  o_ref: (TN, OT_pad) f32
        x_flat = x_ref[...].reshape(TN * L, E)          # contiguous MXU operand
        # One MXU call for all K taps: y[n*L+l, k*O+o] = sum_e x[n,l,e]*w[o,e,k]
        y = jnp.dot(x_flat, w_ref[...], preferred_element_type=jnp.float32)
        y3 = y.reshape(TN, L, KO)
        # Tap combine; accumulator initialized from the k=0 term (no zeros pass).
        acc = y3[:, 0:T, 0:O]
        for k in range(1, K):                           # K small & static
            acc = acc + y3[:, k:k + T, k * O:(k + 1) * O]
        # Lane-dense epilogue: flatten to (TN, T*O), pad lanes to OT_pad so the
        # store is a full, unmasked vst; bias is pre-tiled to the same layout.
        z = acc.reshape(TN, OT)
        if OT_pad > OT:
            z = jnp.concatenate(
                [z, jnp.zeros((TN, OT_pad - OT), jnp.float32)], axis=1)
        # TODO(synk): dropout implemented as identity (inference / eval mode).
        o_ref[...] = jnp.tanh(z + b_ref[...]).astype(o_ref.dtype)

    grid_spec = pltpu.PrefetchScalarGridSpec(
        num_scalar_prefetch=0,
        grid=(N_pad // TN,),
        in_specs=[
            pl.BlockSpec((TN, L, E), lambda n: (n, 0, 0)),   # TN sequences
            pl.BlockSpec((E, KO), lambda n: (0, 0)),         # full weights
            pl.BlockSpec((1, OT_pad), lambda n: (0, 0)),     # pre-tiled bias
        ],
        out_specs=pl.BlockSpec((TN, OT_pad), lambda n: (n, 0)),
    )

    return pl.pallas_call(
        kernel,
        grid_spec=grid_spec,
        out_shape=jax.ShapeDtypeStruct((N_pad, OT_pad), out_dtype),
        compiler_params=pltpu.CompilerParams(
            dimension_semantics=("parallel",),
            vmem_limit_bytes=vmem_limit,
        ),
    )


def cnn_forward(token_ids, embeddings, conv_w, conv_b, kernel_width):
    """Mirrors CNN.forward.

    token_ids : int32 (batch, samples, length)
    embeddings: (vocab, E) float32 (or pre-cast bf16)
    conv_w    : (O, E, K) float32  (PyTorch Conv1d weight layout)
    conv_b    : (O,)      float32
    returns   : (batch, samples, O, length - kernel_width + 1) float32
    """
    B, S, L = token_ids.shape
    O, E, K = conv_w.shape
    assert K == kernel_width
    N = B * S
    T = L - K + 1
    OT = T * O
    OT_pad = _round_up(OT, 128)

    small_vmem = _vmem_capacity_bytes() < (100 << 20)      # v7x-class chip
    TN = _choose_tn(N, L, E, K, T, O, OT_pad, small_vmem=small_vmem)
    num_blocks = pl.cdiv(N, TN)
    N_pad = num_blocks * TN
    vmem_limit = (32 << 20) if small_vmem else (64 << 20)

    # Glue: flatten + embedding lookup (gather) in plain JAX, in bf16 to halve
    # the activation HBM round trip.  Hoist the table cast out of the forward
    # call (pass a bf16 table) when running repeatedly.
    # TODO(synk): fuse the gather into the kernel to remove the round trip.
    emb = (embeddings if embeddings.dtype == jnp.bfloat16
           else embeddings.astype(jnp.bfloat16))
    flat = token_ids.reshape(N, L)
    x = jnp.take(emb, flat, axis=0)                        # (N, L, E) bf16
    if N_pad != N:
        x = jnp.pad(x, ((0, N_pad - N), (0, 0), (0, 0)))

    # Conv weight (O, E, K) -> (E, K*O), bf16:   w2[e, k*O + o] = conv_w[o, e, k]
    w2 = jnp.transpose(conv_w, (1, 2, 0)).reshape(E, K * O).astype(jnp.bfloat16)
    # Bias tiled into the (t, o) lane order of the kernel output, lane-padded.
    b_tiled = jnp.tile(conv_b.astype(jnp.float32), T)      # b[t*O + o] = conv_b[o]
    if OT_pad != OT:
        b_tiled = jnp.pad(b_tiled, (0, OT_pad - OT))
    b_tiled = b_tiled.reshape(1, OT_pad)

    conv_call = make_conv1d_tanh(N_pad, TN, L, E, K, O, OT_pad, vmem_limit)
    y = conv_call(x, w2, b_tiled)                          # (N_pad, OT_pad)

    # Depad + back to PyTorch convention (B, S, O, T).  XLA fuses the slice and
    # the transpose into a single output-sized copy.
    y = y[:N, :OT].reshape(B, S, T, O)
    return jnp.transpose(y, (0, 1, 3, 2))


def _reference(token_ids, embeddings, conv_w, conv_b, kernel_width):
    """Pure-JAX f32 reference for correctness checking."""
    B, S, L = token_ids.shape
    O, E, K = conv_w.shape
    N = B * S
    T = L - K + 1
    x = jnp.take(embeddings, token_ids.reshape(N, L), axis=0)     # (N, L, E)
    out = jnp.zeros((N, T, O), jnp.float32)
    for k in range(K):
        out = out + jnp.einsum('nte,oe->nto', x[:, k:k + T, :], conv_w[:, :, k])
    out = jnp.tanh(out + conv_b[None, None, :])
    return jnp.transpose(out.reshape(B, S, T, O), (0, 1, 3, 2))


if __name__ == "__main__":
    # Small, deterministic configuration.
    batch, samples, length = 2, 3, 16
    vocab_size, embed_dim = 20, 32
    output_size, kernel_width = 8, 3

    key = jax.random.PRNGKey(0)
    k_emb, k_w, k_b, k_tok = jax.random.split(key, 4)

    embeddings = jax.random.normal(k_emb, (vocab_size, embed_dim), jnp.float32)
    conv_w = 0.1 * jax.random.normal(k_w, (output_size, embed_dim, kernel_width),
                                     jnp.float32)
    conv_b = 0.1 * jax.random.normal(k_b, (output_size,), jnp.float32)
    token_ids = jax.random.randint(k_tok, (batch, samples, length), 0, vocab_size,
                                   dtype=jnp.int32)

    out = cnn_forward(token_ids, embeddings, conv_w, conv_b, kernel_width)
    out = jax.block_until_ready(out)

    ref = _reference(token_ids, embeddings, conv_w, conv_b, kernel_width)
    assert out.shape == (batch, samples, output_size, length - kernel_width + 1)
    # bf16 matmul inputs with f32 accumulation -> loosened tolerance vs f32 ref.
    assert jnp.allclose(out, ref, atol=3e-2, rtol=3e-2)

    print("KERNEL_OK")
</pallas_src>

<mosaic_0001>
module attributes {stable_mosaic.version = 11 : i64} {
  func.func @kernel(%arg0: i32, %arg1: memref<8x16x32xbf16, #tpu.memory_space<vmem>>, %arg2: memref<32x24xbf16, #tpu.memory_space<vmem>>, %arg3: memref<1x128xf32, #tpu.memory_space<vmem>>, %arg4: memref<8x128xf32, #tpu.memory_space<vmem>>) attributes {dimension_semantics = [#tpu.dimension_semantics<parallel>], iteration_bounds = array<i64: 1>, scalar_prefetch = 0 : i64, scratch_operands = 0 : i64, tpu.core_type = #tpu.core_type<tc>, window_params = [{transform_indices = @transform_0, window_bounds = array<i64: 8, 16, 32>}, {pipeline_mode = #tpu.pipeline_mode<synchronous>, transform_indices = @transform_1, window_bounds = array<i64: 32, 24>}, {pipeline_mode = #tpu.pipeline_mode<synchronous>, transform_indices = @transform_2, window_bounds = array<i64: 1, 128>}, {transform_indices = @transform_3, window_bounds = array<i64: 8, 128>}]} {
    %c0 = arith.constant 0 : index
    %c0_0 = arith.constant 0 : index
    %c0_1 = arith.constant 0 : index
    %0 = vector.load %arg1[%c0, %c0_0, %c0_1] : memref<8x16x32xbf16, #tpu.memory_space<vmem>>, vector<8x16x32xbf16>
    %1 = vector.shape_cast %0 : vector<8x16x32xbf16> to vector<128x32xbf16>
    %c0_2 = arith.constant 0 : index
    %c0_3 = arith.constant 0 : index
    %2 = vector.load %arg2[%c0_2, %c0_3] : memref<32x24xbf16, #tpu.memory_space<vmem>>, vector<32x24xbf16>
    %cst = arith.constant dense<0.000000e+00> : vector<128x24xf32>
    %3 = tpu.matmul %1, %2, %cst {dimension_numbers = #tpu.dot_dimension_numbers<[1], [0], [0], [1], [0, 0, 1, 1], [], []>} : vector<128x32xbf16>, vector<32x24xbf16>, vector<128x24xf32> -> vector<128x24xf32>
    %4 = vector.shape_cast %3 : vector<128x24xf32> to vector<8x16x24xf32>
    %5 = vector.extract_strided_slice %4 {offsets = [0, 0, 0], sizes = [8, 14, 8], strides = [1, 1, 1]} : vector<8x16x24xf32> to vector<8x14x8xf32>
    %6 = vector.extract_strided_slice %4 {offsets = [0, 1, 8], sizes = [8, 14, 8], strides = [1, 1, 1]} : vector<8x16x24xf32> to vector<8x14x8xf32>
    %7 = arith.addf %5, %6 : vector<8x14x8xf32>
    %8 = vector.extract_strided_slice %4 {offsets = [0, 2, 16], sizes = [8, 14, 8], strides = [1, 1, 1]} : vector<8x16x24xf32> to vector<8x14x8xf32>
    %9 = arith.addf %7, %8 : vector<8x14x8xf32>
    %10 = vector.shape_cast %9 : vector<8x14x8xf32> to vector<8x112xf32>
    %cst_4 = arith.constant 0.000000e+00 : f32
    %11 = vector.broadcast %cst_4 : f32 to vector<8x16xf32>
    %12 = tpu.concatenate %10, %11 in 1 : vector<8x112xf32>, vector<8x16xf32> -> vector<8x128xf32>
    %c0_5 = arith.constant 0 : index
    %c0_6 = arith.constant 0 : index
    %13 = vector.load %arg3[%c0_5, %c0_6] : memref<1x128xf32, #tpu.memory_space<vmem>>, vector<1x128xf32>
    %14 = vector.broadcast %13 : vector<1x128xf32> to vector<8x128xf32>
    %15 = arith.addf %12, %14 : vector<8x128xf32>
    %16 = math.tanh %15 : vector<8x128xf32>
    %c0_7 = arith.constant 0 : index
    %c0_8 = arith.constant 0 : index
    %17 = vector.load %arg4[%c0_7, %c0_8] : memref<8x128xf32, #tpu.memory_space<vmem>>, vector<8x128xf32>
    tpu.vector_store %arg4[%c0_7, %c0_8], %16 {strides = array<i32>} : memref<8x128xf32, #tpu.memory_space<vmem>>, vector<8x128xf32>,
    return
  }
  func.func @transform_0(%arg0: i32) -> (i32, i32, i32) {
    %c0_i32 = arith.constant 0 : i32
    %c0_i32_0 = arith.constant 0 : i32
    %c0_i32_1 = arith.constant 0 : i32
    return %arg0, %c0_i32, %c0_i32_0 : i32, i32, i32
  }
  func.func @transform_1(%arg0: i32) -> (i32, i32) {
    %c0_i32 = arith.constant 0 : i32
    %c0_i32_0 = arith.constant 0 : i32
    %c0_i32_1 = arith.constant 0 : i32
    return %c0_i32, %c0_i32_0 : i32, i32
  }
  func.func @transform_2(%arg0: i32) -> (i32, i32) {
    %c0_i32 = arith.constant 0 : i32
    %c0_i32_0 = arith.constant 0 : i32
    %c0_i32_1 = arith.constant 0 : i32
    return %c0_i32, %c0_i32_0 : i32, i32
  }
  func.func @transform_3(%arg0: i32) -> (i32, i32) {
    %c0_i32 = arith.constant 0 : i32
    %c0_i32_0 = arith.constant 0 : i32
    return %arg0, %c0_i32 : i32, i32
  }
}

</mosaic_0001>

<bundles_post_ra>
// kernel: tpu_custom_call.1
= control target key start
LH: loop header
LB: loop body
LE: loop exit
PB: predicated region body
PF: predicated region fallthrough
CT: control target
= control target key end

     0   :  { %8 = vsyncpa [#allocation3], 0  ;;  %s1179_s0 = inlined_call_operand.hbm [shape: bf16[8,16,32], index: 0, kind: input, shape index: {}]   ;;  %s1180_s1 = inlined_call_operand.vmem [shape: bf16[32,24], index: 1, kind: input, shape index: {}]   ;;  %s1181_s2 = inlined_call_operand.vmem [shape: f32[1,128], index: 2, kind: input, shape index: {}]   ;;  %s1182_s3 = inlined_call_operand.hbm [shape: f32[8,128], index: 3, kind: output, shape index: {}]  }
   0x1   :  { %9 = vsyncpa [#allocation4], 0  ;;  %s909_s12 = smov [#allocation2]   ;;  %s861_s16 = scalar_lea.hbm %s1179_s0, 1024 }
   0x2   :  { %s15_s13 = sshll.u32 %s909_s12, 4  ;;  %p862_p0 = scmp.ne.s32.totalorder %s1179_s0, %s861_s16  ;;  %s16_s13 = int_to_ptr.vmem [resolvable:$true] %s15_s13 }
   0x3   :  { %p865_p1 = scmp.lt.u32.totalorder %s861_s16, %s1179_s0 }
   0x5   :  { %p867_p2 = pnand %p865_p1, %p862_p0 }
   0x7   :  { %870 = shalt.err (!%p867_p2)
}
   0x8   :  { %s871_s21 = scalar_lea.vmem %s16_s13, 1024  ;;  %p876_p4 = scmp.lt.s32.totalorder %s16_s13, %s16_s13 }
   0x9   :  { %p872_p3 = scmp.ne.s32.totalorder %s16_s13, %s871_s21  ;;  %p877_p5 = scmp.lt.s32.totalorder %s871_s21, %s871_s21 }
   0xb   :  { %p878_p6 = por %p877_p5, %p876_p4 }
   0xd   :  { %p879_p7 = pnand %p878_p6, %p872_p3 }
   0xf   :  { %882 = shalt.err (!%p879_p7)
}
  0x10   :  { %s910_s22 = smov 64   ;;  %s911_s23 = smov 4  }
  0x11   :  { %21 = dma.hbm_to_vmem [thread:$0]  %s1179_s0, 1024, %s16_s13, [#allocation3], %s910_s22, %s910_s22, %s911_s23  }
  0x12   :  { %905 = dma.done.wait [#allocation3], 1024  }
  0x13   :  { %906 = vsyncadd [#allocation3], 4294966272  ;;  %v849_v0 = vld [vmem:[%s1180_s1] sm:$0xff]   ;;  %v850_v1 = vld [vmem:[%s1180_s1 + $0x8] sm:$0xff]   ;;  %vm102_vm0 = vcmask 261120   ;;  %vm240_vm1 = vcmask 1046528  }
  0x14   :  { %805 = vmatprep.subr.bf16.mxu0 %v849_v0  ;;  %825 = vmatprep.subr.bf16.mxu1 %v849_v0  ;;  %v851_v2 = vld [vmem:[#allocation2] sm:$0xff]   ;;  %v852_v4 = vld [vmem:[#allocation2 + $0x8] sm:$0xff]   ;;  %v855_v6 = vld [vmem:[#allocation2 + $0x10] sm:$0xff]   ;;  %vm329_vm2 = vcmask 1045504   ;;  %s912_s0 = smov 120   ;;  %s913_s1 = smov 112  }
  0x15   :  { %806 = vmatpush3.bf16.msra.mxu0 %v849_v0  ;;  %827 = vmatpush3.bf16.msra.mxu1 %v849_v0  ;;  %v853_v3 = vld [vmem:[#allocation2 + $0x20] sm:$0xff]   ;;  %v854_v5 = vld [vmem:[#allocation2 + $0x28] sm:$0xff]   ;;  %v857_v7 = vld [vmem:[#allocation2 + $0x30] sm:$0xff]   ;;  %s916_s30 = smov 72   ;;  %s917_s4 = smov 8   ;;  %vm724_vm3 = vcmask 64512  }
  0x16   :  { %807 = vmatprep.subr.bf16.mxu0 %v850_v1  ;;  %826 = vmatprep.subr.bf16.mxu1 %v850_v1  ;;  %v856_v8 = vld [vmem:[#allocation2 + $0x18] sm:$0xff]   ;;  %s918_s5 = smov 16   ;;  %s919_s6 = smov 24   ;;  %vm726_vm4 = vcmask 130048   ;;  %vm728_vm5 = vcmask 195584   ;;  %vm731_vm6 = vcmask 326656  }
  0x17   :  { %809 = vmatprep.mubr.msk.bf16.mxu0 %vm102_vm0, %v851_v2  ;;  %817 = vmatprep.mubr.msk.bf16.mxu1 %vm102_vm0, %v853_v3  ;;  %v858_v9 = vld [vmem:[#allocation2 + $0x38] sm:$0xff]   ;;  %s920_s7 = smov 32   ;;  %s921_s8 = smov 40   ;;  %vm733_vm7 = vcmask 392192   ;;  %vm735_vm8 = vcmask 457728   ;;  %vm737_vm9 = vcmask 523264  }
  0x18   :  { %s922_s9 = smov 48   ;;  %s923_s10 = smov 56   ;;  %vm739_vm10 = vcmask 588800   ;;  %vm741_vm11 = vcmask 654336   ;;  %vm743_vm12 = vcmask 719872   ;;  %vm745_vm13 = vcmask 785408  }
  0x19   :  { %808 = vmatpush3.bf16.msra.mxu0 %v850_v1  ;;  %828 = vmatpush3.bf16.msra.mxu1 %v850_v1  ;;  %s924_s11 = smov 80   ;;  %s925_s12 = smov 88   ;;  %vm747_vm14 = vcmask 850944   ;;  %vm749_vm15 = vcmask 916480  }
  0x1a   :  { %s926_s13 = smov 96   ;;  %s927_s14 = smov 104  }
  0x1b   :  { %s928_s17 = smov [#allocation5]  }
  0x1c   :  { %810 = vmatmul.mubr.msk.bf16.vlgmr.msra.gmra.mrb[0].mxu0 %vm102_vm0, %v852_v4  ;;  %818 = vmatmul.mubr.msk.bf16.vlgmr.msra.gmra.mrb[0].mxu1 %vm102_vm0, %v854_v5  ;;  %s767_s18 = sshll.u32 %s928_s17, 4  ;;  %s768_s18 = int_to_ptr.vmem [resolvable:$true] %s767_s18 }
  0x1d   :  { %813 = vmatprep.mubr.msk.bf16.mxu0 %vm102_vm0, %v855_v6  ;;  %821 = vmatprep.mubr.msk.bf16.mxu1 %vm102_vm0, %v857_v7  ;;  %s883_s19 = scalar_lea.vmem %s768_s18, 128  ;;  %p888_p9 = scmp.lt.s32.totalorder %s768_s18, %s768_s18 }
  0x1e   :  { %p884_p8 = scmp.ne.s32.totalorder %s768_s18, %s883_s19  ;;  %p889_p10 = scmp.lt.s32.totalorder %s883_s19, %s883_s19 }
  0x20   :  { %p890_p11 = por %p889_p10, %p888_p9 }
  0x22   :  { %p891_p12 = pnand %p890_p11, %p884_p8 }
  0x24   :  { %814 = vmatmul.mubr.msk.bf16.gmra.mrb[4].mxu0 %vm102_vm0, %v856_v8  ;;  %822 = vmatmul.mubr.msk.bf16.gmra.mrb[4].mxu1 %vm102_vm0, %v858_v9 }
  0xef   :  { %v977_v10 = vpop.f32.mrb[0].mxu0  ;;  %v979_v11 = vpop.f32.mrb[0].mxu1 }
  0xf0   :  { %v244_v12 = vrot.slane %v977_v10, 1  ;;  %v333_v13 = vrot.slane %v977_v10, 2  ;;  %v983_v14 = vpop.f32.mrb[1].mxu0  ;;  %v256_v15 = vrot.slane %v979_v11, 1  ;;  %v345_v16 = vrot.slane %v979_v11, 2  ;;  %v987_v17 = vpop.f32.mrb[1].mxu1 }
  0xf1   :  { %v241_v18 = vrot.slane %v983_v14, 1  ;;  %v330_v19 = vrot.slane %v983_v14, 2  ;;  %v991_v20 = vpop.f32.mrb[2].mxu0  ;;  %v253_v21 = vrot.slane %v987_v17, 1  ;;  %v342_v22 = vrot.slane %v987_v17, 2  ;;  %v995_v23 = vpop.f32.mrb[2].mxu1 }
  0xf2   :  { %v334_v24 = vrot.slane %v991_v20, 2  ;;  %v998_v25 = vpop.f32.mrb[3].mxu0  ;;  %v257_v26 = vrot.slane %v995_v23, 1  ;;  %v346_v27 = vrot.slane %v995_v23, 2  ;;  %v1002_v28 = vpop.f32.mrb[3].mxu1  ;;  %v245_v29 = vrot.slane %v991_v20, 1 }
  0xf3   :  { %v242_v30 = vrot.slane %v998_v25, 1  ;;  %v331_v31 = vrot.slane %v998_v25, 2  ;;  %v254_v32 = vrot.slane %v1002_v28, 1  ;;  %v343_v33 = vrot.slane %v1002_v28, 2 }
  0xf4   :  { %271 = vrot.lane.b32.xlu1 %v245_v29, %s912_s0  ;;  %v246_v34 = vsel %vm240_vm1, %v244_v12, %v245_v29  ;;  %v258_v35 = vsel %vm240_vm1, %v256_v15, %v257_v26  ;;  %v335_v36 = vsel %vm329_vm2, %v333_v13, %v334_v24  ;;  %v347_v37 = vsel %vm329_vm2, %v345_v16, %v346_v27 }
  0xf5   :  { %269 = vrot.lane.b32.xlu0 %v246_v34, %s912_s0  ;;  %v243_v38 = vsel %vm240_vm1, %v241_v18, %v242_v30  ;;  %v255_v39 = vsel %vm240_vm1, %v253_v21, %v254_v32  ;;  %v332_v40 = vsel %vm329_vm2, %v330_v19, %v331_v31  ;;  %v344_v41 = vsel %vm329_vm2, %v342_v22, %v343_v33 }
  0xf7   :  { %v1023_v42 = vpop.f32.mrb[4].mxu0  ;;  %v1025_v43 = vpop.f32.mrb[4].mxu1 }
  0xf8   :  { %287 = vrot.lane.b32.xlu1 %v257_v26, %s912_s0  ;;  %v250_v44 = vrot.slane %v1023_v42, 1  ;;  %v339_v45 = vrot.slane %v1023_v42, 2  ;;  %v1030_v46 = vpop.f32.mrb[5].mxu0  ;;  %v262_v47 = vrot.slane %v1025_v43, 1  ;;  %v351_v48 = vrot.slane %v1025_v43, 2  ;;  %v1034_v49 = vpop.f32.mrb[5].mxu1 }
  0xf9   :  { %267 = vrot.lane.b32.xlu0 %v242_v30, %s912_s0  ;;  %v247_v50 = vrot.slane %v1030_v46, 1  ;;  %v336_v51 = vrot.slane %v1030_v46, 2  ;;  %v1039_v52 = vpop.f32.mrb[6].mxu0  ;;  %v259_v53 = vrot.slane %v1034_v49, 1  ;;  %v348_v54 = vrot.slane %v1034_v49, 2  ;;  %v1043_v55 = vpop.f32.mrb[6].mxu1 }
  0xfa   :  { %v251_v56 = vrot.slane %v1039_v52, 1  ;;  %v340_v57 = vrot.slane %v1039_v52, 2  ;;  %v1047_v58 = vpop.f32.mrb[7].mxu0  ;;  %v263_v59 = vrot.slane %v1043_v55, 1  ;;  %v352_v60 = vrot.slane %v1043_v55, 2  ;;  %v1051_v61 = vpop.f32.mrb[7].mxu1 }
  0xfb   :  { %v248_v62 = vrot.slane %v1047_v58, 1  ;;  %v337_v63 = vrot.slane %v1047_v58, 2  ;;  %v260_v0 = vrot.slane %v1051_v61, 1  ;;  %v349_v1 = vrot.slane %v1051_v61, 2 }
  0xfc   :  { %360 = vrot.lane.b32.xlu1 %v334_v24, %s913_s1  ;;  %v252_v2 = vsel %vm240_vm1, %v250_v44, %v251_v56  ;;  %v264_v3 = vsel %vm240_vm1, %v262_v47, %v263_v59  ;;  %v341_v4 = vsel %vm329_vm2, %v339_v45, %v340_v57  ;;  %v353_v5 = vsel %vm329_vm2, %v351_v48, %v352_v60 }
  0xfd   :  { %283 = vrot.lane.b32.xlu0 %v254_v32, %s912_s0  ;;  %v261_v6 = vsel %vm240_vm1, %v259_v53, %v260_v0  ;;  %v249_v7 = vsel %vm240_vm1, %v247_v50, %v248_v62  ;;  %v338_v8 = vsel %vm329_vm2, %v336_v51, %v337_v63  ;;  %v350_v9 = vsel %vm329_vm2, %v348_v54, %v349_v1 }
  0xfe   :  { %v423_v47 = vlaneseq  ;;  %v914_v53 = vmov 1983009808  }
  0xff   :  { %v421_v54 = vunpack.c.l.s4 %v914_v53 }
 0x100   :  { %285 = vrot.lane.b32.xlu1 %v258_v35, %s912_s0 }
 0x101   :  { %356 = vrot.lane.b32.xlu0 %v331_v31, %s913_s1 }
 0x104   :  { %358 = vrot.lane.b32.xlu1 %v335_v36, %s913_s1 }
 0x105   :  { %265 = vrot.lane.b32.xlu0 %v243_v38, %s912_s0 }
 0x108   :  { %374 = vrot.lane.b32.xlu1 %v347_v37, %s913_s1 }
 0x109   :  { %281 = vrot.lane.b32.xlu0 %v255_v39, %s912_s0 }
 0x10c   :  { %279 = vrot.lane.b32.xlu1 %v251_v56, %s912_s0 }
 0x10d   :  { %354 = vrot.lane.b32.xlu0 %v332_v40, %s913_s1 }
 0x110   :  { %295 = vrot.lane.b32.xlu1 %v263_v59, %s912_s0 }
 0x111   :  { %370 = vrot.lane.b32.xlu0 %v344_v41, %s913_s1 }
 0x114   :  { %277 = vrot.lane.b32.xlu1 %v252_v2, %s912_s0 }
 0x115   :  { %275 = vrot.lane.b32.xlu0 %v248_v62, %s912_s0 }
 0x118   :  { %293 = vrot.lane.b32.xlu1 %v264_v3, %s912_s0  ;;  %v422_v3 = vunpack.c.0.s8 %v421_v54 }
 0x119   :  { %291 = vrot.lane.b32.xlu0 %v260_v0, %s912_s0 }
 0x11c   :  { %366 = vrot.lane.b32.xlu1 %v341_v4, %s913_s1  ;;  %v424_v4 = vshrl.u32 %v423_v47, 7 }
 0x11d   :  { %364 = vrot.lane.b32.xlu0 %v337_v63, %s913_s1 }
 0x120   :  { %382 = vrot.lane.b32.xlu1 %v353_v5, %s913_s1 }
 0x121   :  { %289 = vrot.lane.b32.xlu0 %v261_v6, %s912_s0 }
 0x124   :  { %273 = vrot.lane.b32.xlu1 %v249_v7, %s912_s0 }
 0x125   :  { %362 = vrot.lane.b32.xlu0 %v338_v8, %s913_s1 }
 0x128   :  { %368 = vrot.lane.b32.xlu1 %v340_v57, %s913_s1  ;;  %v915_v57 = vmov 1934713408  }
 0x129   :  { %378 = vrot.lane.b32.xlu0 %v350_v9, %s913_s1  ;;  %v485_v59 = vunpack.c.l.s4 %v915_v57 }
 0x12b   :  { %v486_v5 = vunpack.c.0.s8 %v485_v59 }
 0x12c   :  { %376 = vrot.lane.b32.xlu1 %v346_v27, %s913_s1 }
 0x12d   :  { %372 = vrot.lane.b32.xlu0 %v343_v33, %s913_s1 }
 0x130   :  { %384 = vrot.lane.b32.xlu1 %v352_v60, %s913_s1 }
 0x131   :  { %380 = vrot.lane.b32.xlu0 %v349_v1, %s913_s1 }
 0x166   :  { %v272_v12 = vpop.permute.xlu1 %271 }
 0x167   :  { %v270_v13 = vpop.permute.xlu0 %269 }
 0x168   :  { %v315_v38 = vadd.f32 %v977_v10, %v270_v13 }
 0x16a   :  { %v288_v15 = vpop.permute.xlu1 %287 }
 0x16b   :  { %v268_v16 = vpop.permute.xlu0 %267 }
 0x16c   :  { %v314_v40 = vadd.f32 %v268_v16, %v998_v25  ;;  %v324_v16 = vadd.f32 %v995_v23, %v288_v15 }
 0x16e   :  { %v361_v18 = vpop.permute.xlu1 %360 }
 0x16f   :  { %v284_v19 = vpop.permute.xlu0 %283 }
 0x172   :  { %v286_v21 = vpop.permute.xlu1 %285 }
 0x173   :  { %v357_v22 = vpop.permute.xlu0 %356  ;;  %v323_v60 = vadd.f32 %v979_v11, %v286_v21  ;;  %v1109_v21 = vsub.s32 %v422_v3, %v424_v4 }
 0x174   :  { %v403_v51 = vadd.f32 %v357_v22, %v314_v40  ;;  %v1111_v22 = vsub.s32 %v486_v5, %v424_v4 }
 0x176   :  { %v359_v24 = vpop.permute.xlu1 %358 }
 0x177   :  { %v266_v26 = vpop.permute.xlu0 %265  ;;  %v404_v45 = vadd.f32 %v359_v24, %v315_v38 }
 0x178   :  { %v313_v9 = vadd.f32 %v266_v26, %v983_v14  ;;  %v322_v14 = vadd.f32 %v284_v19, %v1002_v28 }
 0x17a   :  { %v375_v29 = vpop.permute.xlu1 %374 }
 0x17b   :  { %v282_v27 = vpop.permute.xlu0 %281  ;;  %v412_v0 = vadd.f32 %v375_v29, %v323_v60 }
 0x17c   :  { %v321_v24 = vadd.f32 %v282_v27, %v987_v17 }
 0x17e   :  { %v280_v30 = vpop.permute.xlu1 %279 }
 0x17f   :  { %v355_v31 = vpop.permute.xlu0 %354  ;;  %v320_v29 = vadd.f32 %v1039_v52, %v280_v30 }
 0x182   :  { %v296_v32 = vpop.permute.xlu1 %295 }
 0x183   :  { %v371_v33 = vpop.permute.xlu0 %370 }
 0x186   :  { %v278_v34 = vpop.permute.xlu1 %277 }
 0x187   :  { %v276_v35 = vpop.permute.xlu0 %275  ;;  %v319_v39 = vadd.f32 %v1023_v42, %v278_v34  ;;  %v402_v34 = vadd.f32 %v355_v31, %v313_v9 }
 0x188   :  { %v318_v41 = vadd.f32 %v276_v35, %v1047_v58 }
 0x18a   :  { %v294_v36 = vpop.permute.xlu1 %293 }
 0x18b   :  { %v1097_v37 = vpop.permute.xlu0 %291  ;;  %v327_v10 = vadd.f32 %v1025_v43, %v294_v36  ;;  %v316_v43 = vadd.f32 %v991_v20, %v272_v12  ;;  %v410_v12 = vadd.f32 %v371_v33, %v321_v24 }
 0x18d   :  { %v405_v36 = vadd.f32 %v361_v18, %v316_v43 }
 0x18e   :  { %v367_v44 = vpop.permute.xlu1 %366 }
 0x18f   :  { %v408_v48 = vadd.f32 %v367_v44, %v319_v39  ;;  %v365_v50 = vpop.permute.xlu0 %364 }
 0x190   :  { %v407_v56 = vadd.f32 %v365_v50, %v318_v41 }
 0x191   :  { %v434_v42 = vcombine.low %v404_v45, %v408_v48  ;;  %v435_v62 = vcombine.high %v404_v45, %v408_v48 }
 0x192   :  { %v554_v25 = vcombine.low %v403_v51, %v407_v56  ;;  %v555_v63 = vcombine.high %v403_v51, %v407_v56  ;;  %v383_v58 = vpop.permute.xlu1 %382  ;;  %v326_v56 = vadd.f32 %v1097_v37, %v1051_v61 }
 0x193   :  { %v416_v1 = vadd.f32 %v383_v58, %v327_v10  ;;  %v290_v2 = vpop.permute.xlu0 %289  ;;  %v442_v40 = vrot.slane %v434_v42, %v1109_v21  ;;  %v449_v17 = vrot.slane %v435_v62, %v1109_v21 }
 0x194   :  { %v325_v26 = vadd.f32 %v290_v2, %v1034_v49  ;;  %v1121_v52 = vrot.slane %v554_v25, %v1109_v21  ;;  %v569_v27 = vrot.slane %v555_v63, %v1109_v21 }
 0x195   :  { %v466_v6 = vcombine.low %v412_v0, %v416_v1  ;;  %v467_v7 = vcombine.high %v412_v0, %v416_v1 }
 0x196   :  { %v274_v8 = vpop.permute.xlu1 %273 }
 0x197   :  { %v317_v11 = vadd.f32 %v274_v8, %v1030_v46  ;;  %v363_v13 = vpop.permute.xlu0 %362  ;;  %v328_v46 = vadd.f32 %v1043_v55, %v296_v32  ;;  %v474_v30 = vrot.slane %v466_v6, %v1109_v21  ;;  %v481_v57 = vrot.slane %v467_v7, %v1109_v21 }
 0x199   :  { %v406_v35 = vadd.f32 %v363_v13, %v317_v11 }
 0x19a   :  { %v369_v20 = vpop.permute.xlu1 %368 }
 0x19b   :  { %v418_v23 = vcombine.low %v402_v34, %v406_v35  ;;  %v419_v15 = vcombine.high %v402_v34, %v406_v35  ;;  %v409_v38 = vadd.f32 %v369_v20, %v320_v29  ;;  %v379_v39 = vpop.permute.xlu0 %378 }
 0x19c   :  { %v414_v18 = vadd.f32 %v379_v39, %v325_v26 }
 0x19d   :  { %v426_v28 = vrot.slane %v418_v23, %v1109_v21  ;;  %v433_v55 = vrot.slane %v419_v15, %v1109_v21  ;;  %v570_v19 = vcombine.low %v405_v36, %v409_v38  ;;  %v571_v49 = vcombine.high %v405_v36, %v409_v38 }
 0x19e   :  { %v450_v31 = vcombine.low %v410_v12, %v414_v18  ;;  %v451_v32 = vcombine.high %v410_v12, %v414_v18  ;;  %v377_v33 = vpop.permute.xlu1 %376 }
 0x19f   :  { %v482_v41 = vcombine.low %v426_v28, %v442_v40  ;;  %v483_v44 = vcombine.high %v426_v28, %v442_v40  ;;  %v498_v45 = vcombine.low %v433_v55, %v449_v17  ;;  %v499_v47 = vcombine.high %v433_v55, %v449_v17  ;;  %v373_v48 = vpop.permute.xlu0 %372 }
 0x1a0   :  { %v578_v50 = vrot.slane %v570_v19, %v1109_v21  ;;  %v585_v51 = vrot.slane %v571_v49, %v1109_v21  ;;  %v458_v53 = vrot.slane %v450_v31, %v1109_v21  ;;  %v465_v54 = vrot.slane %v451_v32, %v1109_v21 }
 0x1a1   :  { %v413_v59 = vadd.f32 %v377_v33, %v324_v16  ;;  %v411_v60 = vadd.f32 %v373_v48, %v322_v14  ;;  %v1137_v5 = vrot.slane %v482_v41, %v1111_v22  ;;  %v497_v37 = vrot.slane %v483_v44, %v1111_v22 }
 0x1a2   :  { %v618_v10 = vcombine.low %v1121_v52, %v578_v50  ;;  %v619_v42 = vcombine.high %v1121_v52, %v578_v50  ;;  %v634_v62 = vcombine.low %v569_v27, %v585_v51  ;;  %v514_v25 = vcombine.low %v458_v53, %v474_v30  ;;  %v385_v63 = vpop.permute.xlu1 %384 }
 0x1a3   :  { %v515_v58 = vcombine.high %v458_v53, %v474_v30  ;;  %v530_v0 = vcombine.low %v465_v54, %v481_v57  ;;  %v531_v1 = vcombine.high %v465_v54, %v481_v57  ;;  %v417_v2 = vadd.f32 %v385_v63, %v328_v46  ;;  %v381_v3 = vpop.permute.xlu0 %380 }
 0x1a4   :  { %v415_v4 = vadd.f32 %v381_v3, %v326_v56  ;;  %v1140_v61 = vrot.slane %v514_v25, %v1111_v22  ;;  %v506_v16 = vrot.slane %v498_v45, %v1111_v22  ;;  %v513_v20 = vrot.slane %v499_v47, %v1111_v22 }
 0x1a5   :  { %v602_v6 = vcombine.low %v413_v59, %v417_v2  ;;  %v603_v7 = vcombine.high %v413_v59, %v417_v2  ;;  %v529_v8 = vrot.slane %v515_v58, %v1111_v22  ;;  %v538_v9 = vrot.slane %v530_v0, %v1111_v22 }
 0x1a6   :  { %v586_v11 = vcombine.low %v411_v60, %v415_v4  ;;  %v587_v13 = vcombine.high %v411_v60, %v415_v4  ;;  %v547_v43 = vcombine.high %v1137_v5, %v1140_v61  ;;  %v545_v12 = vrot.slane %v531_v1, %v1111_v22  ;;  %v794_v4 = vld [vmem:[%s1181_s2] ss:$0 sm:$0xff] }
 0x1a7   :  { %v610_v24 = vrot.slane %v602_v6, %v1109_v21  ;;  %v617_v29 = vrot.slane %v603_v7, %v1109_v21  ;;  %v548_v34 = vcombine.low %v497_v37, %v529_v8  ;;  %v549_v35 = vcombine.high %v497_v37, %v529_v8 }
 0x1a8   :  { %v594_v36 = vrot.slane %v586_v11, %v1109_v21  ;;  %v601_v14 = vrot.slane %v587_v13, %v1109_v21  ;;  %v550_v46 = vcombine.low %v506_v16, %v538_v9  ;;  %v551_v26 = vcombine.high %v506_v16, %v538_v9 }
 0x1a9   :  { %v546_v23 = vcombine.low %v1137_v5, %v1140_v61  ;;  %v626_v40 = vrot.slane %v618_v10, %v1111_v22  ;;  %v552_v17 = vcombine.low %v513_v20, %v545_v12  ;;  %v553_v52 = vcombine.high %v513_v20, %v545_v12 }
 0x1aa   :  { %v642_v15 = vcombine.low %v594_v36, %v610_v24  ;;  %v643_v38 = vcombine.high %v594_v36, %v610_v24  ;;  %v658_v39 = vcombine.low %v601_v14, %v617_v29  ;;  %v633_v21 = vrot.slane %v619_v42, %v1111_v22 }
 0x1ab   :  { %v641_v19 = vrot.slane %v634_v62, %v1111_v22 }
 0x1ac   :  { %v650_v18 = vrot.slane %v642_v15, %v1111_v22  ;;  %v657_v28 = vrot.slane %v643_v38, %v1111_v22  ;;  %v665_v55 = vrot.slane %v658_v39, %v1111_v22 }
 0x1ae   :  { %v667_v49 = vcombine.high %v626_v40, %v650_v18  ;;  %v666_v27 = vcombine.low %v626_v40, %v650_v18  ;;  %v668_v30 = vcombine.low %v633_v21, %v657_v28  ;;  %v669_v31 = vcombine.high %v633_v21, %v657_v28 }
 0x1af   :  { %v670_v32 = vcombine.low %v641_v19, %v665_v55  ;;  %v671_v33 = vcombine.high %v641_v19, %v665_v55 }
 0x1b0   :  { %705 = vrot.lane.b32.xlu0 %v667_v49, %s916_s30  ;;  %701 = vrot.lane.b32.xlu1 %v666_v27, %s910_s22 }
 0x1b4   :  { %673 = vrot.lane.b32.xlu0 %v547_v43, %s917_s4  ;;  %677 = vrot.lane.b32.xlu1 %v548_v34, %s918_s5 }
 0x1b8   :  { %681 = vrot.lane.b32.xlu0 %v549_v35, %s919_s6  ;;  %685 = vrot.lane.b32.xlu1 %v550_v46, %s920_s7 }
 0x1bc   :  { %689 = vrot.lane.b32.xlu0 %v551_v26, %s921_s8  ;;  %693 = vrot.lane.b32.xlu1 %v552_v17, %s922_s9 }
 0x1c0   :  { %697 = vrot.lane.b32.xlu0 %v553_v52, %s923_s10  ;;  %709 = vrot.lane.b32.xlu1 %v668_v30, %s924_s11 }
 0x1c4   :  { %713 = vrot.lane.b32.xlu0 %v669_v31, %s925_s12  ;;  %717 = vrot.lane.b32.xlu1 %v670_v32, %s926_s13 }
 0x1c8   :  { %721 = vrot.lane.b32.xlu0 %v671_v33, %s927_s14 }
 0x222   :  { %v706_v22 = vpop.permute.xlu0 %705  ;;  %v702_v41 = vpop.permute.xlu1 %701 }
 0x226   :  { %v674_v44 = vpop.permute.xlu0 %673  ;;  %v678_v45 = vpop.permute.xlu1 %677 }
 0x227   :  { %v725_v47 = vsel %vm724_vm3, %v546_v23, %v674_v44 }
 0x228   :  { %v727_v48 = vsel %vm726_vm4, %v725_v47, %v678_v45 }
 0x22a   :  { %v682_v50 = vpop.permute.xlu0 %681  ;;  %v686_v51 = vpop.permute.xlu1 %685 }
 0x22b   :  { %v729_v53 = vsel %vm728_vm5, %v727_v48, %v682_v50 }
 0x22c   :  { %v730_v54 = vsel %vm102_vm0, %v729_v53, %v686_v51 }
 0x22e   :  { %v690_v56 = vpop.permute.xlu0 %689  ;;  %v694_v57 = vpop.permute.xlu1 %693 }
 0x22f   :  { %v732_v59 = vsel %vm731_vm6, %v730_v54, %v690_v56 }
 0x230   :  { %v734_v60 = vsel %vm733_vm7, %v732_v59, %v694_v57 }
 0x232   :  { %v698_v10 = vpop.permute.xlu0 %697  ;;  %v710_v42 = vpop.permute.xlu1 %709 }
 0x233   :  { %v736_v62 = vsel %vm735_vm8, %v734_v60, %v698_v10 }
 0x234   :  { %v738_v25 = vsel %vm737_vm9, %v736_v62, %v702_v41 }
 0x235   :  { %v740_v63 = vsel %vm739_vm10, %v738_v25, %v706_v22 }
 0x236   :  { %v742_v58 = vsel %vm741_vm11, %v740_v63, %v710_v42  ;;  %v714_v0 = vpop.permute.xlu0 %713  ;;  %v718_v2 = vpop.permute.xlu1 %717 }
 0x237   :  { %v744_v1 = vsel %vm743_vm12, %v742_v58, %v714_v0 }
 0x238   :  { %v746_v3 = vsel %vm745_vm13, %v744_v1, %v718_v2 }
 0x23a   :  { %v722_v5 = vpop.permute.xlu0 %721 }
 0x23b   :  { %v748_v61 = vsel %vm747_vm14, %v746_v3, %v722_v5 }
 0x23c   :  { %v750_v37 = vsel %vm749_vm15, %v748_v61, 0.0 }
 0x23d   :  { %v758_v6 = vadd.f32 %v794_v4, %v750_v37 }
 0x23f   :  { %859 = vtanh.f32 %v758_v6 }
 0x249   :  { %v860_v7 = vpop.eup %859 }
 0x24a   :  { %760 = vst [vmem:[#allocation5] sm:$0xff] %v860_v7 }
 0x24b   :  { %894 = shalt.err (!%p891_p12)
}
 0x24c   :  { %s895_s2 = scalar_lea.hbm %s1182_s3, 128 }
 0x24d   :  { %p896_p13 = scmp.ne.s32.totalorder %s1182_s3, %s895_s2  ;;  %p899_p0 = scmp.lt.u32.totalorder %s895_s2, %s1182_s3 }
 0x24f   :  { %p901_p1 = pnand %p899_p0, %p896_p13 }
 0x251   :  { %904 = shalt.err (!%p901_p1)
}
 0x252   :  { %770 = dma.vmem_to_hbm [thread:$0]  %s768_s18, 128, %s1182_s3, [#allocation4]  }
 0x253   :  { %907 = dma.done.wait [#allocation4], 128  }
 0x254   :  { %908 = vsyncadd [#allocation4], 4294967168 }
 0x255   :  { %774 = vsyncpa [#allocation3], 1 }
 0x256   :  { %775 = vsyncpa [#allocation4], 1 }

</bundles_post_ra>
